<compile_context>
chip_gen: v7x
topology: tpu7x:2x2x1
jax: 0.10.0
libtpu: 0.0.40
codegen_flags: <defaults>
</compile_context>

<pallas_src>
import functools

import numpy as np
import jax
import jax.numpy as jnp
from jax.experimental import pallas as pl
from jax.experimental.pallas import tpu as pltpu

# ---- deterministic "configer" hyper-parameters (module has no weights) ----
DELTA_V = 0.5
DELTA_D = 1.5
ALPHA = 1.0
BETA = 1.0
GAMMA = 0.001
MAX_VIEWS = 10
IGNORE_LABEL = -1
NUM_CLASSES = 4      # static upper bound on class ids; labels in {-1, 0..K-1}

# Inputs whose whole feature map fits well inside scoped VMEM on every TPU
# generation (incl. v7x) take the fused single-launch path.
_FUSED_MAX_BYTES = 8 * 1024 * 1024


# --------------------------- in-kernel helpers ------------------------------
def _load_tile(feats_ref, labels_ref, *, tile_index, tile_p, hw, mask):
    """Load (C, TP) features (native dtype) + (1, TP) labels for one tile.

    `mask` is a Python bool (compiled out when False).  When set, lanes whose
    global pixel index >= hw get label=IGNORE and f=0, so ragged tails and
    duplicated overflow tiles contribute nothing (and garbage block padding
    can never reach the MXU as 0*NaN).
    """
    f = feats_ref[0]                                             # (C, TP)
    lab = labels_ref[0]                                          # (1, TP)
    if mask:
        lane = jax.lax.broadcasted_iota(jnp.int32, (1, tile_p), 1)
        pix = tile_index * tile_p + lane
        ok = pix < hw
        lab = jnp.where(ok, lab, IGNORE_LABEL)
        f = jnp.where(ok, f, jnp.zeros((), f.dtype))
    return f, lab


def _onehot(lab, num_classes, tile_p, feat_dtype):
    cls_ids = jax.lax.broadcasted_iota(jnp.int32, (num_classes, tile_p), 0)
    oh = lab == cls_ids                                          # (K, TP) bool
    oh32 = oh.astype(jnp.float32)
    oh_mxu = oh32 if feat_dtype == jnp.float32 else oh.astype(feat_dtype)
    return oh, oh32, oh_mxu


def _var_tile(f, oh, oh32, means, msq, delta_v):
    """Per-tile, per-class sum over pixels of relu(||f - mean_lab|| - dv)^2."""
    cross = jax.lax.dot_general(means.astype(f.dtype), f,
                                (((1,), (0,)), ((), ())),
                                preferred_element_type=jnp.float32)   # (K, TP)
    # Single fused own-class selection of (2 m.f - ||m||^2); ignore / masked
    # pixels have an all-zero onehot column and drop out below.
    own = jnp.sum(jnp.where(oh, 2.0 * cross - msq, 0.0),
                  axis=0, keepdims=True)                              # (1, TP)
    fsq = (f * f).astype(jnp.float32)
    f2 = jnp.sum(fsq, axis=0, keepdims=True)                          # (1, TP)
    d2 = jnp.maximum(f2 - own, 0.0)
    hinge = jnp.maximum(jnp.sqrt(d2) - delta_v, 0.0)
    h2 = hinge * hinge                                                # (1, TP)
    # TODO(synk): fold this lane-reduce into a (K,TP)x(1,TP) MXU dot if the
    # bundle ever shows XLU pressure; both passes are HBM-bound today.
    return jnp.sum(oh32 * h2, axis=1, keepdims=True)                  # (K, 1)


# --------------------------- multipass kernels ------------------------------
def _class_stats_kernel(feats_ref, labels_ref, sum_ref, cnt_ref, *,
                        num_classes, tile_p, hw, tiles_per_part, mask):
    """Accumulate per-class feature sums (K, C) and pixel counts (K, 1)."""
    @pl.when((pl.program_id(1) == 0) & (pl.program_id(2) == 0))
    def _():
        sum_ref[...] = jnp.zeros_like(sum_ref)
        cnt_ref[...] = jnp.zeros_like(cnt_ref)

    tile_index = pl.program_id(0) * tiles_per_part + pl.program_id(2)
    f, lab = _load_tile(feats_ref, labels_ref, tile_index=tile_index,
                        tile_p=tile_p, hw=hw, mask=mask)
    _, oh32, oh_mxu = _onehot(lab, num_classes, tile_p, f.dtype)

    # (K, C) += onehot @ f^T : long pixel contraction on the MXU; onehot as
    # LHS keeps the accumulator lane-dense (lanes = C) and drops the .T glue.
    sum_ref[...] += jax.lax.dot_general(
        oh_mxu, f, (((1,), (1,)), ((), ())),
        preferred_element_type=jnp.float32)[None]                 # (1, K, C)
    cnt_ref[...] += jnp.sum(oh32, axis=1, keepdims=True)[None]    # (1, K, 1)


def _var_kernel(feats_ref, labels_ref, means_ref, msq_ref, var_ref, *,
                num_classes, tile_p, hw, tiles_per_part, mask, delta_v):
    """Accumulate per-class sum of relu(||f_i - mean_{label_i}|| - delta_v)^2."""
    @pl.when((pl.program_id(1) == 0) & (pl.program_id(2) == 0))
    def _():
        var_ref[...] = jnp.zeros_like(var_ref)

    tile_index = pl.program_id(0) * tiles_per_part + pl.program_id(2)
    f, lab = _load_tile(feats_ref, labels_ref, tile_index=tile_index,
                        tile_p=tile_p, hw=hw, mask=mask)
    oh, oh32, _ = _onehot(lab, num_classes, tile_p, f.dtype)

    var_ref[...] += _var_tile(f, oh, oh32, means_ref[...], msq_ref[...],
                              delta_v)[None]                      # (1, K, 1)


# ----------------------------- fused kernel ---------------------------------
def _fused_kernel(feats_ref, labels_ref, means_ref, cnt_ref, var_ref,
                  sum_scr, msq_scr, *, num_classes, tile_p, hw, mask, delta_v):
    """Both passes in one launch: grid axis 0 is the phase (0=stats, 1=var)."""
    phase = pl.program_id(0)
    first = (pl.program_id(1) == 0) & (pl.program_id(2) == 0)
    last = ((pl.program_id(1) == pl.num_programs(1) - 1) &
            (pl.program_id(2) == pl.num_programs(2) - 1))

    f, lab = _load_tile(feats_ref, labels_ref, tile_index=pl.program_id(2),
                        tile_p=tile_p, hw=hw, mask=mask)
    oh, oh32, oh_mxu = _onehot(lab, num_classes, tile_p, f.dtype)

    @pl.when((phase == 0) & first)
    def _():
        sum_scr[...] = jnp.zeros_like(sum_scr)
        cnt_ref[...] = jnp.zeros_like(cnt_ref)

    @pl.when(phase == 0)
    def _():
        sum_scr[...] += jax.lax.dot_general(
            oh_mxu, f, (((1,), (1,)), ((), ())),
            preferred_element_type=jnp.float32)                  # (K, C)
        cnt_ref[...] += jnp.sum(oh32, axis=1, keepdims=True)     # (K, 1)

    # Phase boundary: per-class means & ||mean||^2 in-kernel; no HBM round
    # trip or second launch for small inputs.
    @pl.when((phase == 0) & last)
    def _():
        m = sum_scr[...] / jnp.maximum(cnt_ref[...], 1.0)
        means_ref[...] = m
        msq_scr[...] = jnp.sum(m * m, axis=1, keepdims=True)
        var_ref[...] = jnp.zeros_like(var_ref)

    @pl.when(phase == 1)
    def _():
        var_ref[...] += _var_tile(f, oh, oh32, means_ref[...], msq_scr[...],
                                  delta_v)


# ------------------------------ tiling glue ----------------------------------
def _pick_tile_p(hw, c, itemsize):
    """Bytes-targeted lane tile: ~2 MiB of feats per block (amortizes the
    ~0.35 us per-grid-step cost on every HBM generation), clamped to
    [256, 8192] lanes, rounded to 128, preferring a divisor of hw so the
    tail mask compiles out.  A full-extent block is used when it fits."""
    target_bytes = 2 << 20
    tp = target_bytes // max(1, c * itemsize)
    tp = max(256, min(tp, 8192))
    hw_pad = -(-hw // 128) * 128
    tp = min(tp, hw_pad)
    tp = max(128, (tp // 128) * 128)
    if tp >= hw:
        return hw                     # single full-extent block: always legal
    if hw % 128 == 0 and hw % tp != 0:
        d = tp - 128
        while d >= 128 and hw % d != 0:
            d -= 128
        if d >= 128 and 2 * d >= tp:  # accept only if tile doesn't shrink > 2x
            tp = d
    return tp


def _vmem_limit_bytes(c, tile_p, itemsize):
    feats_blk = c * tile_p * itemsize
    lab_blk = tile_p * 4
    need = 2 * (feats_blk + lab_blk) + (2 << 20)    # double-buffered + slack
    # >= the 16/32 MiB scoped defaults, well under v7x's 64 MiB physical VMEM.
    return int(min(max(need, 32 << 20), 48 << 20))


def _finalize(means, counts, var_sums, num_classes):
    """Tiny per-class finalization (K x K), plain JAX glue; reproduces the
    reference's `other_classes` indexing quirk in the pairwise term."""
    safe_counts = jnp.maximum(counts, 1.0)
    valid = counts > MAX_VIEWS                      # torch.unique + count filter
    total = jnp.sum(valid.astype(jnp.float32))
    # (total <= 1 divides by zero, matching the reference's failure mode.)
    loss_var = jnp.sum(jnp.where(valid, var_sums / safe_counts, 0.0)) / total
    loss_reg = jnp.sum(
        jnp.where(valid, jnp.sqrt(jnp.sum(means * means, axis=1)), 0.0)) / total

    # Pairwise term: for every a in [0, T) the partner b ranges over [0, T-1)
    # of the FULL (sorted, valid-first) mean list — the reference quirk kept.
    perm = jnp.argsort(jnp.logical_not(valid), stable=True)
    mc = means[perm]                                             # (K, C)
    diff = mc[:, None, :] - mc[None, :, :]
    dists = jnp.sqrt(jnp.sum(diff * diff, axis=-1))              # (K, K)
    hinge_d = jnp.maximum(2.0 * DELTA_D - dists, 0.0)
    pos = jnp.arange(num_classes).astype(jnp.float32)
    pair_mask = (pos[:, None] < total) & (pos[None, :] < (total - 1.0))
    loss_dist = jnp.sum(pair_mask.astype(jnp.float32) * hinge_d * hinge_d)
    loss_dist = loss_dist / (total * (total - 1.0))
    return ALPHA * loss_var + BETA * loss_dist + GAMMA * loss_reg


# ------------------------------ wrappers ------------------------------------
def discrim_loss(feats_nchw, labels, *, force_multipass=False):
    """DiscrimLoss.forward(feats (B,C,H,W), labels (B,Ht,Wt)) -> scalar."""
    B, C, H, W = feats_nchw.shape
    K = NUM_CLASSES
    HW = H * W
    itemsize = jnp.dtype(feats_nchw.dtype).itemsize

    # --- glue: nearest-neighbour resize of labels to (H, W) (cheap int gather)
    Hin, Win = labels.shape[1], labels.shape[2]
    rows = jnp.floor(jnp.arange(H) * (Hin / H)).astype(jnp.int32)
    cols = jnp.floor(jnp.arange(W) * (Win / W)).astype(jnp.int32)
    labels_r = labels[:, rows][:, :, cols].astype(jnp.int32)

    # Copy-free, lane-dense layout: pixels on lanes, proj_dim on sublanes.
    feats3 = feats_nchw.reshape(B, C, HW)          # free reshape of NCHW
    lab3 = labels_r.reshape(B, 1, HW)

    tile_p = _pick_tile_p(HW, C, itemsize)
    n_tiles = -(-HW // tile_p)
    vmem_lim = _vmem_limit_bytes(C, tile_p, itemsize)
    feats_bytes = B * C * HW * itemsize

    # ---- small-input fast path: one launch, 2-phase grid, means in-kernel ---
    if feats_bytes <= _FUSED_MAX_BYTES and not force_multipass:
        mask = (n_tiles * tile_p) != HW
        means, cnts, var_sums = pl.pallas_call(
            functools.partial(_fused_kernel, num_classes=K, tile_p=tile_p,
                              hw=HW, mask=mask, delta_v=DELTA_V),
            out_shape=(jax.ShapeDtypeStruct((K, C), jnp.float32),
                       jax.ShapeDtypeStruct((K, 1), jnp.float32),
                       jax.ShapeDtypeStruct((K, 1), jnp.float32)),
            grid=(2, B, n_tiles),
            in_specs=[pl.BlockSpec((1, C, tile_p), lambda ph, b, i: (b, 0, i)),
                      pl.BlockSpec((1, 1, tile_p), lambda ph, b, i: (b, 0, i))],
            out_specs=(pl.BlockSpec((K, C), lambda ph, b, i: (0, 0)),
                       pl.BlockSpec((K, 1), lambda ph, b, i: (0, 0)),
                       pl.BlockSpec((K, 1), lambda ph, b, i: (0, 0))),
            scratch_shapes=[pltpu.VMEM((K, C), jnp.float32),
                            pltpu.VMEM((K, 1), jnp.float32)],
            compiler_params=pltpu.CompilerParams(
                dimension_semantics=("arbitrary",) * 3,   # phases are sequential
                vmem_limit_bytes=vmem_lim),
        )(feats3, lab3)
        return _finalize(means, cnts[:, 0], var_sums[:, 0], K)

    # ---- large-input path: two passes, pixel-tile axis split across cores ---
    # The leading "parallel" axis splits PIXEL tiles (not batch) across
    # TensorCores, so odd / unit batch sizes still use both TCs on v7x;
    # harmless size-1 / single-core elsewhere.
    # TODO(synk): switch to pltpu.CORE_PARALLEL if the Mosaic lowering is found
    # not to shard a plain "parallel" axis across the two v7x TensorCores.
    P = 2 if n_tiles >= 2 else 1
    TPP = -(-n_tiles // P)                          # tiles per parallel slice
    mask = (P * TPP * tile_p) != HW
    if P * TPP == n_tiles:
        def tile_idx(p, i):
            return p * TPP + i
    else:
        def tile_idx(p, i):                          # clamp duplicated overflow tile
            return jnp.minimum(p * TPP + i, n_tiles - 1)

    feats_spec = pl.BlockSpec((1, C, tile_p),
                              lambda p, b, i: (b, 0, tile_idx(p, i)))
    lab_spec = pl.BlockSpec((1, 1, tile_p),
                            lambda p, b, i: (b, 0, tile_idx(p, i)))
    grid = (P, B, TPP)
    cparams = pltpu.CompilerParams(
        dimension_semantics=("parallel", "arbitrary", "arbitrary"),
        vmem_limit_bytes=vmem_lim)

    # --- pass 1: per-class feature sums and counts (Pallas) ---
    part_sums, part_cnts = pl.pallas_call(
        functools.partial(_class_stats_kernel, num_classes=K, tile_p=tile_p,
                          hw=HW, tiles_per_part=TPP, mask=mask),
        out_shape=(jax.ShapeDtypeStruct((P, K, C), jnp.float32),
                   jax.ShapeDtypeStruct((P, K, 1), jnp.float32)),
        grid=grid,
        in_specs=[feats_spec, lab_spec],
        out_specs=(pl.BlockSpec((1, K, C), lambda p, b, i: (p, 0, 0)),
                   pl.BlockSpec((1, K, 1), lambda p, b, i: (p, 0, 0))),
        compiler_params=cparams,
    )(feats3, lab3)

    sums = jnp.sum(part_sums, axis=0)                           # (K, C)
    counts = jnp.sum(part_cnts, axis=0)[:, 0]                   # (K,)
    means = sums / jnp.maximum(counts, 1.0)[:, None]            # (K, C)
    msq = jnp.sum(means * means, axis=1, keepdims=True)         # (K, 1)

    # --- pass 2: per-class variance term (Pallas) ---
    part_var = pl.pallas_call(
        functools.partial(_var_kernel, num_classes=K, tile_p=tile_p, hw=HW,
                          tiles_per_part=TPP, mask=mask, delta_v=DELTA_V),
        out_shape=jax.ShapeDtypeStruct((P, K, 1), jnp.float32),
        grid=grid,
        in_specs=[feats_spec, lab_spec,
                  pl.BlockSpec((K, C), lambda p, b, i: (0, 0)),
                  pl.BlockSpec((K, 1), lambda p, b, i: (0, 0))],
        out_specs=pl.BlockSpec((1, K, 1), lambda p, b, i: (p, 0, 0)),
        compiler_params=cparams,
    )(feats3, lab3, means, msq)
    var_sums = jnp.sum(part_var, axis=0)[:, 0]                  # (K,)

    return _finalize(means, counts, var_sums, K)


def discrim_ce_loss_seq(preds, target, with_embed=False):
    """DiscrimCELossSeq.forward."""
    if 'embed' in preds:
        return discrim_loss(preds['embed'], target)
    # TODO(synk): 'seg' branch (bilinear upsample + FSCELoss / FSAuxRMILoss)
    # not implemented; only the discriminative 'embed' path is exercised here.
    raise NotImplementedError("only the 'embed' path is implemented")


# ------------------------------ reference -----------------------------------
def _reference_loss(feats_nchw, labels):
    feats = np.asarray(feats_nchw, dtype=np.float32)
    labels = np.asarray(labels)
    B, C, H, W = feats.shape
    Hin, Win = labels.shape[1], labels.shape[2]
    rows = np.floor(np.arange(H) * (Hin / H)).astype(np.int64)
    cols = np.floor(np.arange(W) * (Win / W)).astype(np.int64)
    labels = labels[:, rows][:, :, cols]
    f = feats.transpose(0, 2, 3, 1).reshape(-1, C)
    lab = labels.reshape(-1)
    classes = sorted(np.unique(lab).tolist())
    classes = [c for c in classes if c != IGNORE_LABEL]
    classes = [c for c in classes if int((lab == c).sum()) > MAX_VIEWS]
    total = len(classes)
    loss_var = 0.0
    loss_dist = 0.0
    loss_reg = 0.0
    means = []
    for c in classes:
        cf = f[lab == c]
        m = cf.mean(0)
        means.append(m)
        d = np.linalg.norm(m - cf, axis=1) - DELTA_V
        loss_var += float((d[d > 0] ** 2).sum()) / cf.shape[0]
        loss_reg += float(np.linalg.norm(m))
    for a in range(total):
        for b in range(total - 1):   # reference's indexing quirk
            dd = 2.0 * DELTA_D - float(np.linalg.norm(means[a] - means[b]))
            if dd > 0:
                loss_dist += dd ** 2
    loss_var /= total
    loss_dist /= total * (total - 1)
    loss_reg /= total
    return ALPHA * loss_var + BETA * loss_dist + GAMMA * loss_reg


# --------------------------------- main --------------------------------------
if __name__ == "__main__":
    base_key = jax.random.PRNGKey(0)

    def make_case(idx, B, C, H, W, Ht, Wt):
        kf, kl = jax.random.split(jax.random.fold_in(base_key, idx))
        feats = jax.random.normal(kf, (B, C, H, W), dtype=jnp.float32)
        target = jax.random.randint(kl, (B, Ht, Wt), -1, NUM_CLASSES)
        return feats, target

    def check(loss, feats, target):
        loss = jax.block_until_ready(loss)
        ref = _reference_loss(np.asarray(feats), np.asarray(target))
        assert abs(float(loss) - ref) < 1e-3 * max(1.0, abs(ref)), (float(loss), ref)

    # Case 1: shipped shape -> fused single-launch path, via the module API.
    feats1, target1 = make_case(1, 2, 32, 16, 16, 16, 16)
    loss1 = jax.jit(lambda p, t: discrim_ce_loss_seq(p, t))({'embed': feats1}, target1)
    check(loss1, feats1, target1)

    # Case 2: odd batch, larger spatial, forced two-pass path -> exercises the
    # dual-TensorCore pixel-tile split and the ragged-tail masking.
    feats2, target2 = make_case(2, 1, 32, 92, 92, 92, 92)
    loss2 = jax.jit(functools.partial(discrim_loss, force_multipass=True))(feats2, target2)
    check(loss2, feats2, target2)

    # Case 3: fused path with non-128-aligned H*W (full-extent block) and a
    # genuine nearest-neighbour label resize (10x10 -> 20x20).
    feats3, target3 = make_case(3, 2, 16, 20, 20, 10, 10)
    loss3 = jax.jit(lambda p, t: discrim_ce_loss_seq(p, t))({'embed': feats3}, target3)
    check(loss3, feats3, target3)

    print("KERNEL_OK")
</pallas_src>

<mosaic_0001>
module attributes {stable_mosaic.version = 11 : i64} {
  func.func @_fused_kernel(%arg0: i32, %arg1: i32, %arg2: i32, %arg3: memref<1x32x256xf32, #tpu.memory_space<vmem>>, %arg4: memref<1x1x256xi32, #tpu.memory_space<vmem>>, %arg5: memref<4x32xf32, #tpu.memory_space<vmem>>, %arg6: memref<4x1xf32, #tpu.memory_space<vmem>>, %arg7: memref<4x1xf32, #tpu.memory_space<vmem>>, %arg8: memref<4x32xf32, #tpu.memory_space<vmem>>, %arg9: memref<4x1xf32, #tpu.memory_space<vmem>>) attributes {dimension_semantics = [#tpu.dimension_semantics<arbitrary>, #tpu.dimension_semantics<arbitrary>, #tpu.dimension_semantics<arbitrary>], iteration_bounds = array<i64: 2, 2, 1>, scalar_prefetch = 0 : i64, scratch_operands = 2 : i64, tpu.core_type = #tpu.core_type<tc>, window_params = [{transform_indices = @transform_0, window_bounds = array<i64: 1, 32, 256>}, {transform_indices = @transform_1, window_bounds = array<i64: 1, 1, 256>}, {pipeline_mode = #tpu.pipeline_mode<synchronous>, transform_indices = @transform_2, window_bounds = array<i64: 4, 32>}, {pipeline_mode = #tpu.pipeline_mode<synchronous>, transform_indices = @transform_3, window_bounds = array<i64: 4, 1>}, {pipeline_mode = #tpu.pipeline_mode<synchronous>, transform_indices = @transform_4, window_bounds = array<i64: 4, 1>}]} {
    %c0_i32 = arith.constant 0 : i32
    %0 = arith.cmpi eq, %arg1, %c0_i32 : i32
    %c0_i32_0 = arith.constant 0 : i32
    %1 = arith.cmpi eq, %arg2, %c0_i32_0 : i32
    %2 = arith.andi %0, %1 : i1
    %c1_i32 = arith.constant 1 : i32
    %3 = arith.cmpi eq, %arg1, %c1_i32 : i32
    %c0_i32_1 = arith.constant 0 : i32
    %4 = arith.cmpi eq, %arg2, %c0_i32_1 : i32
    %5 = arith.andi %3, %4 : i1
    %c0 = arith.constant 0 : index
    %c0_2 = arith.constant 0 : index
    %c0_3 = arith.constant 0 : index
    %6 = vector.load %arg3[%c0, %c0_2, %c0_3] : memref<1x32x256xf32, #tpu.memory_space<vmem>>, vector<1x32x256xf32>
    %7 = vector.shape_cast %6 : vector<1x32x256xf32> to vector<32x256xf32>
    %c0_4 = arith.constant 0 : index
    %c0_5 = arith.constant 0 : index
    %c0_6 = arith.constant 0 : index
    %8 = vector.load %arg4[%c0_4, %c0_5, %c0_6] : memref<1x1x256xi32, #tpu.memory_space<vmem>>, vector<1x1x256xi32>
    %9 = vector.shape_cast %8 : vector<1x1x256xi32> to vector<1x256xi32>
    %10 = tpu.iota {dimensions = array<i32: 0>} : vector<4x256xi32>
    %11 = vector.broadcast %9 : vector<1x256xi32> to vector<4x256xi32>
    %12 = arith.cmpi eq, %11, %10 : vector<4x256xi32>
    %13 = arith.extui %12 : vector<4x256xi1> to vector<4x256xi32>
    %14 = arith.sitofp %13 : vector<4x256xi32> to vector<4x256xf32>
    %c0_i32_7 = arith.constant 0 : i32
    %15 = arith.cmpi eq, %arg0, %c0_i32_7 : i32
    %16 = arith.andi %15, %2 : i1
    %17 = arith.extui %16 : i1 to i32
    %c0_i32_8 = arith.constant 0 : i32
    %18 = arith.cmpi ne, %17, %c0_i32_8 : i32
    scf.if %18 {
      %cst = arith.constant 0.000000e+00 : f32
      %29 = vector.broadcast %cst : f32 to vector<4x32xf32>
      %c0_15 = arith.constant 0 : index
      %c0_16 = arith.constant 0 : index
      %30 = vector.load %arg8[%c0_15, %c0_16] : memref<4x32xf32, #tpu.memory_space<vmem>>, vector<4x32xf32>
      tpu.vector_store %arg8[%c0_15, %c0_16], %29 {strides = array<i32>} : memref<4x32xf32, #tpu.memory_space<vmem>>, vector<4x32xf32>,
      %cst_17 = arith.constant 0.000000e+00 : f32
      %31 = vector.broadcast %cst_17 : f32 to vector<4x1xf32>
      %c0_18 = arith.constant 0 : index
      %c0_19 = arith.constant 0 : index
      %32 = vector.load %arg6[%c0_18, %c0_19] : memref<4x1xf32, #tpu.memory_space<vmem>>, vector<4x1xf32>
      tpu.vector_store %arg6[%c0_18, %c0_19], %31 {strides = array<i32>} : memref<4x1xf32, #tpu.memory_space<vmem>>, vector<4x1xf32>,
    } else {
    }
    %c0_i32_9 = arith.constant 0 : i32
    %19 = arith.cmpi eq, %arg0, %c0_i32_9 : i32
    %20 = arith.extui %19 : i1 to i32
    %c0_i32_10 = arith.constant 0 : i32
    %21 = arith.cmpi ne, %20, %c0_i32_10 : i32
    scf.if %21 {
      %c0_15 = arith.constant 0 : index
      %c0_16 = arith.constant 0 : index
      %29 = vector.load %arg8[%c0_15, %c0_16] : memref<4x32xf32, #tpu.memory_space<vmem>>, vector<4x32xf32>
      %cst = arith.constant dense<0.000000e+00> : vector<4x32xf32>
      %30 = tpu.matmul %14, %7, %cst {dimension_numbers = #tpu.dot_dimension_numbers<[1], [1], [0], [0], [0, 0, 1, 0], [], []>} : vector<4x256xf32>, vector<32x256xf32>, vector<4x32xf32> -> vector<4x32xf32>
      %31 = arith.addf %29, %30 : vector<4x32xf32>
      %c0_17 = arith.constant 0 : index
      %c0_18 = arith.constant 0 : index
      %32 = vector.load %arg8[%c0_17, %c0_18] : memref<4x32xf32, #tpu.memory_space<vmem>>, vector<4x32xf32>
      tpu.vector_store %arg8[%c0_17, %c0_18], %31 {strides = array<i32>} : memref<4x32xf32, #tpu.memory_space<vmem>>, vector<4x32xf32>,
      %c0_19 = arith.constant 0 : index
      %c0_20 = arith.constant 0 : index
      %33 = vector.load %arg6[%c0_19, %c0_20] : memref<4x1xf32, #tpu.memory_space<vmem>>, vector<4x1xf32>
      %cst_21 = arith.constant dense<0.000000e+00> : vector<4xf32>
      %34 = vector.multi_reduction <add>, %14, %cst_21 [1] : vector<4x256xf32> to vector<4xf32>
      %35 = vector.shape_cast %34 : vector<4xf32> to vector<4x1xf32>
      %36 = arith.addf %33, %35 : vector<4x1xf32>
      %c0_22 = arith.constant 0 : index
      %c0_23 = arith.constant 0 : index
      %37 = vector.load %arg6[%c0_22, %c0_23] : memref<4x1xf32, #tpu.memory_space<vmem>>, vector<4x1xf32>
      tpu.vector_store %arg6[%c0_22, %c0_23], %36 {strides = array<i32>} : memref<4x1xf32, #tpu.memory_space<vmem>>, vector<4x1xf32>,
    } else {
    }
    %c0_i32_11 = arith.constant 0 : i32
    %22 = arith.cmpi eq, %arg0, %c0_i32_11 : i32
    %23 = arith.andi %22, %5 : i1
    %24 = arith.extui %23 : i1 to i32
    %c0_i32_12 = arith.constant 0 : i32
    %25 = arith.cmpi ne, %24, %c0_i32_12 : i32
    scf.if %25 {
      %c0_15 = arith.constant 0 : index
      %c0_16 = arith.constant 0 : index
      %29 = vector.load %arg8[%c0_15, %c0_16] : memref<4x32xf32, #tpu.memory_space<vmem>>, vector<4x32xf32>
      %c0_17 = arith.constant 0 : index
      %c0_18 = arith.constant 0 : index
      %30 = vector.load %arg6[%c0_17, %c0_18] : memref<4x1xf32, #tpu.memory_space<vmem>>, vector<4x1xf32>
      %cst = arith.constant 1.000000e+00 : f32
      %31 = vector.broadcast %cst : f32 to vector<4x1xf32>
      %32 = arith.maximumf %30, %31 : vector<4x1xf32>
      %33 = vector.broadcast %32 : vector<4x1xf32> to vector<4x32xf32>
      %34 = arith.divf %29, %33 : vector<4x32xf32>
      %c0_19 = arith.constant 0 : index
      %c0_20 = arith.constant 0 : index
      %35 = vector.load %arg5[%c0_19, %c0_20] : memref<4x32xf32, #tpu.memory_space<vmem>>, vector<4x32xf32>
      tpu.vector_store %arg5[%c0_19, %c0_20], %34 {strides = array<i32>} : memref<4x32xf32, #tpu.memory_space<vmem>>, vector<4x32xf32>,
      %36 = arith.mulf %34, %34 : vector<4x32xf32>
      %cst_21 = arith.constant dense<0.000000e+00> : vector<4xf32>
      %37 = vector.multi_reduction <add>, %36, %cst_21 [1] : vector<4x32xf32> to vector<4xf32>
      %38 = vector.shape_cast %37 : vector<4xf32> to vector<4x1xf32>
      %c0_22 = arith.constant 0 : index
      %c0_23 = arith.constant 0 : index
      %39 = vector.load %arg9[%c0_22, %c0_23] : memref<4x1xf32, #tpu.memory_space<vmem>>, vector<4x1xf32>
      tpu.vector_store %arg9[%c0_22, %c0_23], %38 {strides = array<i32>} : memref<4x1xf32, #tpu.memory_space<vmem>>, vector<4x1xf32>,
      %cst_24 = arith.constant 0.000000e+00 : f32
      %40 = vector.broadcast %cst_24 : f32 to vector<4x1xf32>
      %c0_25 = arith.constant 0 : index
      %c0_26 = arith.constant 0 : index
      %41 = vector.load %arg7[%c0_25, %c0_26] : memref<4x1xf32, #tpu.memory_space<vmem>>, vector<4x1xf32>
      tpu.vector_store %arg7[%c0_25, %c0_26], %40 {strides = array<i32>} : memref<4x1xf32, #tpu.memory_space<vmem>>, vector<4x1xf32>,
    } else {
    }
    %c1_i32_13 = arith.constant 1 : i32
    %26 = arith.cmpi eq, %arg0, %c1_i32_13 : i32
    %27 = arith.extui %26 : i1 to i32
    %c0_i32_14 = arith.constant 0 : i32
    %28 = arith.cmpi ne, %27, %c0_i32_14 : i32
    scf.if %28 {
      %c0_15 = arith.constant 0 : index
      %c0_16 = arith.constant 0 : index
      %29 = vector.load %arg7[%c0_15, %c0_16] : memref<4x1xf32, #tpu.memory_space<vmem>>, vector<4x1xf32>
      %c0_17 = arith.constant 0 : index
      %c0_18 = arith.constant 0 : index
      %30 = vector.load %arg5[%c0_17, %c0_18] : memref<4x32xf32, #tpu.memory_space<vmem>>, vector<4x32xf32>
      %c0_19 = arith.constant 0 : index
      %c0_20 = arith.constant 0 : index
      %31 = vector.load %arg9[%c0_19, %c0_20] : memref<4x1xf32, #tpu.memory_space<vmem>>, vector<4x1xf32>
      %cst = arith.constant dense<0.000000e+00> : vector<4x256xf32>
      %32 = tpu.matmul %30, %7, %cst {dimension_numbers = #tpu.dot_dimension_numbers<[1], [0], [0], [1], [0, 0, 1, 1], [], []>} : vector<4x32xf32>, vector<32x256xf32>, vector<4x256xf32> -> vector<4x256xf32>
      %cst_21 = arith.constant 2.000000e+00 : f32
      %33 = vector.broadcast %cst_21 : f32 to vector<4x256xf32>
      %34 = arith.mulf %33, %32 : vector<4x256xf32>
      %35 = vector.broadcast %31 : vector<4x1xf32> to vector<4x256xf32>
      %36 = arith.subf %34, %35 : vector<4x256xf32>
      %cst_22 = arith.constant 0.000000e+00 : f32
      %37 = vector.broadcast %cst_22 : f32 to vector<4x256xf32>
      %38 = arith.select %12, %36, %37 : vector<4x256xi1>, vector<4x256xf32>
      %cst_23 = arith.constant dense<0.000000e+00> : vector<256xf32>
      %39 = vector.multi_reduction <add>, %38, %cst_23 [0] : vector<4x256xf32> to vector<256xf32>
      %40 = vector.shape_cast %39 : vector<256xf32> to vector<1x256xf32>
      %41 = arith.mulf %7, %7 : vector<32x256xf32>
      %cst_24 = arith.constant dense<0.000000e+00> : vector<256xf32>
      %42 = vector.multi_reduction <add>, %41, %cst_24 [0] : vector<32x256xf32> to vector<256xf32>
      %43 = vector.shape_cast %42 : vector<256xf32> to vector<1x256xf32>
      %44 = arith.subf %43, %40 : vector<1x256xf32>
      %cst_25 = arith.constant 0.000000e+00 : f32
      %45 = vector.broadcast %cst_25 : f32 to vector<1x256xf32>
      %46 = arith.maximumf %44, %45 : vector<1x256xf32>
      %47 = math.sqrt %46 : vector<1x256xf32>
      %cst_26 = arith.constant 5.000000e-01 : f32
      %48 = vector.broadcast %cst_26 : f32 to vector<1x256xf32>
      %49 = arith.subf %47, %48 : vector<1x256xf32>
      %cst_27 = arith.constant 0.000000e+00 : f32
      %50 = vector.broadcast %cst_27 : f32 to vector<1x256xf32>
      %51 = arith.maximumf %49, %50 : vector<1x256xf32>
      %52 = arith.mulf %51, %51 : vector<1x256xf32>
      %53 = vector.broadcast %52 : vector<1x256xf32> to vector<4x256xf32>
      %54 = arith.mulf %14, %53 : vector<4x256xf32>
      %cst_28 = arith.constant dense<0.000000e+00> : vector<4xf32>
      %55 = vector.multi_reduction <add>, %54, %cst_28 [1] : vector<4x256xf32> to vector<4xf32>
      %56 = vector.shape_cast %55 : vector<4xf32> to vector<4x1xf32>
      %57 = arith.addf %29, %56 : vector<4x1xf32>
      %c0_29 = arith.constant 0 : index
      %c0_30 = arith.constant 0 : index
      %58 = vector.load %arg7[%c0_29, %c0_30] : memref<4x1xf32, #tpu.memory_space<vmem>>, vector<4x1xf32>
      tpu.vector_store %arg7[%c0_29, %c0_30], %57 {strides = array<i32>} : memref<4x1xf32, #tpu.memory_space<vmem>>, vector<4x1xf32>,
    } else {
    }
    return
  }
  func.func @transform_0(%arg0: i32, %arg1: i32, %arg2: i32) -> (i32, i32, i32) {
    %c0_i32 = arith.constant 0 : i32
    %c0_i32_0 = arith.constant 0 : i32
    return %arg1, %c0_i32, %arg2 : i32, i32, i32
  }
  func.func @transform_1(%arg0: i32, %arg1: i32, %arg2: i32) -> (i32, i32, i32) {
    %c0_i32 = arith.constant 0 : i32
    %c0_i32_0 = arith.constant 0 : i32
    return %arg1, %c0_i32, %arg2 : i32, i32, i32
  }
  func.func @transform_2(%arg0: i32, %arg1: i32, %arg2: i32) -> (i32, i32) {
    %c0_i32 = arith.constant 0 : i32
    %c0_i32_0 = arith.constant 0 : i32
    %c0_i32_1 = arith.constant 0 : i32
    return %c0_i32, %c0_i32_0 : i32, i32
  }
  func.func @transform_3(%arg0: i32, %arg1: i32, %arg2: i32) -> (i32, i32) {
    %c0_i32 = arith.constant 0 : i32
    %c0_i32_0 = arith.constant 0 : i32
    %c0_i32_1 = arith.constant 0 : i32
    return %c0_i32, %c0_i32_0 : i32, i32
  }
  func.func @transform_4(%arg0: i32, %arg1: i32, %arg2: i32) -> (i32, i32) {
    %c0_i32 = arith.constant 0 : i32
    %c0_i32_0 = arith.constant 0 : i32
    %c0_i32_1 = arith.constant 0 : i32
    return %c0_i32, %c0_i32_0 : i32, i32
  }
}

</mosaic_0001>

<bundles_post_ra>
// kernel: _lambda_.1
= control target key start
LH: loop header
LB: loop body
LE: loop exit
PB: predicated region body
PF: predicated region fallthrough
CT: control target
= control target key end

     0   :  { %s806_s15 = smov 0   ;;  %s808_s16 = smov 0   ;;  %s997_s0 = inlined_call_operand.vmem [shape: f32[2,32,256], index: 0, kind: input, shape index: {}]   ;;  %s998_s1 = inlined_call_operand.vmem [shape: s32[2,1,256], index: 1, kind: input, shape index: {}]   ;;  %s999_s2 = inlined_call_operand.vmem [shape: f32[4,32], index: 2, kind: output, shape index: {0}]   ;;  %s1000_s3 = inlined_call_operand.vmem [shape: f32[4,1], index: 3, kind: output, shape index: {1}]   ;;  %s1001_s4 = inlined_call_operand.vmem [shape: f32[4,1], index: 4, kind: output, shape index: {2}]  }
   0x1   :  { %s810_s17 = smov 0   ;;  %s812_s18 = smov 0  }
   0x2   :  { %s814_s19 = smov 0  }
   0x3 LB: > { %s30_s20 = sadd.s32 1, %s764_s17  ;;  %s34_s21 = sadd.s32 1, %s768_s18  ;;  %s772_s19 = sphi %s814_s19, %s15_s19   ;;  %s768_s18 = sphi %s812_s18, %s1006_s18   ;;  %s764_s17 = sphi %s810_s17, %s1005_s17   ;;  %s760_s16 = sphi %s808_s16, %s1004_s16   ;;  %s756_s15 = sphi %s806_s15, %s1003_s15  }
   0x4   : > { %p32_p0 = scmp.ge.s32.totalorder %s30_s20, 2  ;;  %p643_p1 = scmp.ge.s32.totalorder %s772_s19, 1 }
   0x5   : > { %p194_p2 = scmp.lt.s32.totalorder %s772_s19, 5 }
   0x6   : > { %s1008_s20 = smov (%p32_p0, %s30_s20), 0  ;;  %s1010_s21 = smov (!%p32_p0, %s34_s21), %s768_s18 }
   0x7   : > { %p195_p3 = pnand %p643_p1, %p194_p2  ;;  %p36_p4 = scmp.ge.s32.totalorder %s1010_s21, 2 }
   0x8   : > { %p228_p5 = scmp.lt.s32.totalorder (!%p195_p3), %s756_s15, 1  ;;  %p246_p6 = scmp.eq.s32.totalorder (!%p195_p3), %s756_s15, 0  ;;  %v262_v0 = vlaneseq (!%p195_p3)  ;;  %v774_v15 = vmov (!%p195_p3), 0.0  }
   0x9   : > { %s1012_s21 = smov (%p36_p4, %s1010_s21), 0  ;;  %198 = sbr.rel (%p195_p3) target bundleno = 969 (0x3c9), region = 28 }
   0xa   : > { %p250_p7 = scmp.eq.s32.totalorder (!%p195_p3), %s756_s15, 1  ;;  %p278_p8 = scmp.eq.s32.totalorder (!%p195_p3), %s760_s16, 0  ;;  %v845_v1 = vshrl.u32 (!%p195_p3), %v262_v0, 7 }
   0xc   : > { %p849_p9 = pnand (!%p195_p3), %p278_p8, %p246_p6  ;;  %v266_v2 = vsub.s32 (!%p195_p3), 0, %v845_v1  ;;  %v270_v3 = vsub.s32 (!%p195_p3), 1, %v845_v1 }
  0x10   : > { %s229_s22 = scalar_select %p228_p5, %s756_s15, 1 }
  0x11   : > { %vm283_vm2 = vcmask (!%p849_p9), 257024   ;;  %vm285_vm3 = vcmask (!%p849_p9), 3072   ;;  %v775_v18 = vmov (!%p849_p9), 0.0  }
  0x12   : > { %s660_s24 = sshll.u32 %s229_s22, 6  ;;  %s646_s25 = sshll.u32 %s229_s22, 1  ;;  %284 = vst.msk [vmem:[#allocation2] sm:$0xf] (!%p849_p9), %vm283_vm2, %v775_v18 }
  0x13   : > { %s235_s28 = scalar_lea.vmem %s997_s0, %s660_s24  ;;  %s244_s5 = scalar_lea.vmem %s998_s1, %s646_s25  ;;  %286 = vst.msk [vmem:[%s1000_s3] sm:$0xf] (!%p849_p9), %vm285_vm3, %v775_v18 }
  0x14   : > { %v861_v4 = vld [vmem:[%s235_s28] sm:$0xff]  ;;  %v863_v5 = vld [vmem:[%s235_s28 + $0x8] sm:$0xff]  ;;  %v865_v6 = vld [vmem:[%s235_s28 + $0x10] sm:$0xff]  ;;  %282 = sbr.rel (%p849_p9) target bundleno = 27 (0x1b), region = 32 }
  0x15   : > { %v867_v7 = vld [vmem:[%s235_s28 + $0x18] sm:$0xff]  ;;  %v869_v8 = vld [vmem:[%s235_s28 + $0x20] sm:$0xff]  ;;  %v871_v9 = vld [vmem:[%s235_s28 + $0x28] sm:$0xff] }
  0x16   : > { %v873_v10 = vld [vmem:[%s235_s28 + $0x30] sm:$0xff]  ;;  %v875_v11 = vld [vmem:[%s235_s28 + $0x38] sm:$0xff]  ;;  %v261_v12 = vld [vmem:[%s244_s5] sm:$0x3] }
  0x17   : > { %v877_v13 = vrot.slane %v261_v12, %v266_v2  ;;  %v879_v14 = vrot.slane %v261_v12, %v270_v3 }
  0x19   : > { %vm272_vm0 = vcmp.eq.s32.totalorder %v877_v13, %v845_v1  ;;  %vm273_vm1 = vcmp.eq.s32.totalorder %v879_v14, %v845_v1 }
  0x1a   : > { %v888_v16 = vsel %vm272_vm0, 1.0, %v774_v15  ;;  %v893_v17 = vsel %vm273_vm1, 1.0, %v774_v15 }
  0x1b PF: > { %p651_p10 = scmp.ne.s32.totalorder %s760_s16, 0 }
  0x1c   : > { %v663_v19 = vpack.c.bf16 (!%p651_p10), %v867_v7, %v863_v5  ;;  %v665_v20 = vpack.c.bf16 (!%p651_p10), %v865_v6, %v861_v4  ;;  %v667_v21 = vpack.c.bf16 (!%p651_p10), %v875_v11, %v871_v9  ;;  %vm365_vm4 = vcmask (!%p651_p10), 1043456   ;;  %v364_v27 = vld [vmem:[%s1000_s3] sm:$0xf] (!%p651_p10) }
  0x1d   : > { %289 = sbr.rel (%p651_p10) target bundleno = 261 (0x105), region = 36  ;;  %v776_v22 = vmov (!%p651_p10), 1.0   ;;  %v366_v23 = vsel (!%p651_p10), %vm365_vm4, %v888_v16, 0.0  ;;  %v367_v24 = vsel (!%p651_p10), %vm365_vm4, %v893_v17, 0.0  ;;  %v669_v26 = vpack.c.bf16 (!%p651_p10), %v873_v10, %v869_v8  ;;  %v290_v30 = vld [vmem:[#allocation2] sm:$0xf] (!%p651_p10) }
  0x1e   : > { %664 = vmatprep.subr.bf16.mxu0 (!%p651_p10), %v663_v19  ;;  %652 = vmatprep.mubr.msk.f32.mxu0 (!%p651_p10), %vm273_vm1, %v776_v22  ;;  %v368_v25 = vadd.f32 (!%p651_p10), %v367_v24, %v366_v23  ;;  %vm372_vm5 = vcmask (!%p651_p10), 3072   ;;  %vm362_vm6 = vcmask (!%p651_p10), 257024  }
  0x1f   : > { %666 = vmatpush1.bf16.xpose.msra.mxu0 (!%p651_p10), %v665_v20 }
  0x20   : > { %668 = vmatprep.subr.bf16.mxu0 (!%p651_p10), %v667_v21  ;;  %369 = vadd.xlane.f32.xlu0 (!%p651_p10), %v368_v25 }
  0x27   : > { %670 = vmatpush1.bf16.xpose.msra.mxu0 %v669_v26 }
  0x2e   : > { %653 = vmatmul.mubr.msk.f32.vlgmr.msra.gmra.mrb[0].mxu0 %vm272_vm0, %v776_v22 }
  0xad   : > { %v370_v28 = vpop.xlane.xlu0 %369 }
  0xae   : > { %v371_v29 = vadd.f32 %v370_v28, %v364_v27 }
  0xb0   : > { %373 = vst.msk [vmem:[%s1000_s3] sm:$0xf] %vm372_vm5, %v371_v29 }
 0x101   : > { %v357_v31 = vpop.f32.mrb[0].mxu0 }
 0x102   : > { %v361_v32 = vadd.f32 %v357_v31, %v290_v30  ;;  %v359_v33 = vpop.f32.mrb[1].mxu0 }
 0x104   : > { %363 = vst.msk [vmem:[#allocation2] sm:$0xf] %vm362_vm6, %v361_v32 }
 0x105 PF: > { %p374_p11 = pnand %p278_p8, %p250_p7 }
 0x106   : > { %v379_v34 = vld [vmem:[%s1000_s3] sm:$0xf] (!%p374_p11)  ;;  %v777_v35 = vmov (!%p374_p11), 0   ;;  %vm394_vm7 = vcmask (!%p374_p11), 3072   ;;  %v778_v37 = vmov (!%p374_p11), 0.0   ;;  %vm388_vm8 = vcmask (!%p374_p11), 257024  }
 0x107   : > { %377 = sbr.rel (%p374_p11) target bundleno = 552 (0x228), region = 40  ;;  %726 = vset.pattern.permute.xlu0 (!%p374_p11), %v777_v35  ;;  %v380_v36 = vmax.f32 (!%p374_p11), %v379_v34, 1.0  ;;  %396 = vst.msk [vmem:[%s1001_s4] sm:$0xf] (!%p374_p11), %vm394_vm7, %v778_v37 }
 0x109   : > { %383 = vperm.xlu0 (!%p374_p11), %726, %v380_v36  }
 0x10b   : > { %v378_v39 = vld [vmem:[#allocation2] sm:$0xf] (!%p374_p11) }
 0x188   : > { %v384_v38 = vpop.permute.xlu0 %383 }
 0x189   : > { %727 = vrcp.f32 %v384_v38 }
 0x193   : > { %v728_v40 = vpop.eup %727 }
 0x194   : > { %v387_v41 = vmul.f32 %v728_v40, %v378_v39 }
 0x196   : > { %v390_v42 = vmul.f32 %v387_v41, %v387_v41  ;;  %389 = vst.msk [vmem:[%s999_s2] sm:$0xf] %vm388_vm8, %v387_v41 }
 0x198   : > { %v391_v43 = vsel %vm388_vm8, %v390_v42, 0.0 }
 0x199   : > { %392 = vadd.xlane.f32.xlu0 %v391_v43 }
 0x226   : > { %v393_v44 = vpop.xlane.xlu0 %392 }
 0x227   : > { %395 = vst.msk [vmem:[#allocation3] sm:$0xf] %vm394_vm7, %v393_v44 }
 0x228 PF: > { %p654_p12 = scmp.ne.s32.totalorder %s760_s16, 1 }
 0x229   : > { %v671_v45 = vpack.c.bf16 (!%p654_p12), %v867_v7, %v863_v5  ;;  %v673_v46 = vpack.c.bf16 (!%p654_p12), %v865_v6, %v861_v4  ;;  %v675_v47 = vpack.c.bf16 (!%p654_p12), %v875_v11, %v871_v9  ;;  %v779_v49 = vmov (!%p654_p12), 0.0   ;;  %v402_v52 = vld [vmem:[%s999_s2] sm:$0xf] (!%p654_p12) }
 0x22a   : > { %400 = sbr.rel (%p654_p12) target bundleno = 969 (0x3c9), region = 44  ;;  %472 = vmatprep.mubr.f32.mxu0 (!%p654_p12), %v779_v49  ;;  %v677_v50 = vpack.c.bf16 (!%p654_p12), %v873_v10, %v869_v8  ;;  %v780_v51 = vmov (!%p654_p12), 0   ;;  %vm404_vm9 = vcmask (!%p654_p12), 261120   ;;  %v505_v53 = vmul.f32 (!%p654_p12), %v861_v4, %v861_v4 }
 0x22b   : > { %672 = vmatprep.subr.bf16.mxu0 (!%p654_p12), %v671_v45  ;;  %729 = vset.pattern.permute.xlu0 (!%p654_p12), %v780_v51  ;;  %v507_v54 = vmul.f32 (!%p654_p12), %v865_v6, %v865_v6  ;;  %v506_v55 = vmul.f32 (!%p654_p12), %v863_v5, %v863_v5  ;;  %v508_v56 = vmul.f32 (!%p654_p12), %v867_v7, %v867_v7  ;;  %vm490_vm10 = vcmask (!%p654_p12), 1043456  }
 0x22c   : > { %674 = vmatpush1.bf16.msra.mxu0 (!%p654_p12), %v673_v46  ;;  %v509_v57 = vmul.f32 (!%p654_p12), %v869_v8, %v869_v8  ;;  %v510_v59 = vmul.f32 (!%p654_p12), %v871_v9, %v871_v9  ;;  %v511_v61 = vmul.f32 (!%p654_p12), %v873_v10, %v873_v10  ;;  %v512_v63 = vmul.f32 (!%p654_p12), %v875_v11, %v875_v11 }
 0x22d   : > { %676 = vmatprep.subr.bf16.mxu0 (!%p654_p12), %v675_v47  ;;  %v513_v58 = vadd.f32 (!%p654_p12), %v507_v54, %v505_v53  ;;  %v522_v60 = vadd.f32 (!%p654_p12), %v508_v56, %v506_v55  ;;  %vm563_vm15 = vcmask (!%p654_p12), 3072  }
 0x22e   : > { %v403_v48 = vld [vmem:[#allocation3] sm:$0xf] (!%p654_p12) }
 0x22f   : > { %483 = vperm.xlu0 (!%p654_p12), %729, %v403_v48   ;;  %v514_v62 = vadd.f32 (!%p654_p12), %v513_v58, %v509_v57  ;;  %v523_v0 = vadd.f32 (!%p654_p12), %v522_v60, %v510_v59 }
 0x230   : > { %678 = vmatpush1.bf16.msra.mxu0 (!%p654_p12), %v677_v50 }
 0x231   : > { %v515_v2 = vadd.f32 %v514_v62, %v511_v61  ;;  %v524_v3 = vadd.f32 %v523_v0, %v512_v63 }
 0x233   : > { %655 = vmatmul.mubr.msk.f32.vlgmr.msra.gmra.mrb[0].mxu0 %vm404_vm9, %v402_v52  ;;  %v516_v4 = vrot.slane %v515_v2, 4  ;;  %v525_v5 = vrot.slane %v524_v3, 4 }
 0x235   : > { %v517_v6 = vadd.f32 %v516_v4, %v515_v2  ;;  %v526_v8 = vadd.f32 %v525_v5, %v524_v3  ;;  %v401_v2 = vld [vmem:[%s1001_s4] sm:$0xf] }
 0x237   : > { %v518_v19 = vrot.slane %v517_v6, 2  ;;  %v527_v10 = vrot.slane %v526_v8, 2 }
 0x239   : > { %v519_v24 = vadd.f32 %v518_v19, %v517_v6  ;;  %v528_v27 = vadd.f32 %v527_v10, %v526_v8 }
 0x23b   : > { %v520_v31 = vrot.slane %v519_v24, 1  ;;  %v529_v33 = vrot.slane %v528_v27, 1 }
 0x23d   : > { %v521_v36 = vadd.f32 %v520_v31, %v519_v24  ;;  %v530_v1 = vadd.f32 %v529_v33, %v528_v27 }
 0x2ae   : > { %v484_v12 = vpop.permute.xlu0 %483 }
 0x306   : > { %v474_v7 = vpop.f32.mrb[0].mxu0 }
 0x307   : > { %v479_v15 = vmul.f32 2.0, %v474_v7  ;;  %v476_v18 = vpop.f32.mrb[1].mxu0 }
 0x308   : > { %v480_v9 = vmul.f32 2.0, %v476_v18 }
 0x309   : > { %v486_v20 = vsub.f32 %v479_v15, %v484_v12 }
 0x30a   : > { %v487_v21 = vsub.f32 %v480_v9, %v484_v12 }
 0x30b   : > { %v488_v11 = vsel %vm272_vm0, %v486_v20, 0.0 }
 0x30c   : > { %v489_v22 = vsel %vm273_vm1, %v487_v21, 0.0  ;;  %v491_v23 = vsel %vm490_vm10, %v488_v11, 0.0 }
 0x30d   : > { %v492_v25 = vrot.slane %v491_v23, 4  ;;  %v498_v26 = vsel %vm490_vm10, %v489_v22, 0.0 }
 0x30e   : > { %v499_v28 = vrot.slane %v498_v26, 4 }
 0x30f   : > { %v493_v29 = vadd.f32 %v492_v25, %v491_v23 }
 0x310   : > { %v500_v30 = vadd.f32 %v499_v28, %v498_v26 }
 0x311   : > { %v494_v32 = vrot.slane %v493_v29, 2 }
 0x312   : > { %v501_v34 = vrot.slane %v500_v30, 2 }
 0x313   : > { %v495_v13 = vadd.f32 %v494_v32, %v493_v29 }
 0x314   : > { %v502_v35 = vadd.f32 %v501_v34, %v500_v30 }
 0x315   : > { %v496_v37 = vrot.slane %v495_v13, 1 }
 0x316   : > { %v503_v14 = vrot.slane %v502_v35, 1 }
 0x317   : > { %v497_v38 = vadd.f32 %v496_v37, %v495_v13 }
 0x318   : > { %v504_v39 = vadd.f32 %v503_v14, %v502_v35 }
 0x319   : > { %v531_v40 = vsub.f32 %v521_v36, %v497_v38 }
 0x31a   : > { %v532_v41 = vsub.f32 %v530_v1, %v504_v39 }
 0x31b   : > { %v533_v42 = vmax.f32 %v531_v40, 0.0 }
 0x31c   : > { %v534_v43 = vmax.f32 %v532_v41, 0.0 }
 0x31d   : > { %730 = vrsqrt.f32 %v533_v42  ;;  %vm537_vm11 = vcmp.eq.f32.partialorder %v533_v42, inf  ;;  %v540_v47 = vand.u32 2147483648, %v533_v42  ;;  %vm539_vm12 = vcmp.eq.f32.partialorder %v533_v42, 0.0 }
 0x31e   : > { %732 = vrsqrt.f32 %v534_v43  ;;  %vm544_vm13 = vcmp.eq.f32.partialorder %v534_v43, inf  ;;  %v547_v50 = vand.u32 2147483648, %v534_v43  ;;  %vm546_vm14 = vcmp.eq.f32.partialorder %v534_v43, 0.0 }
 0x327   : > { %v731_v44 = vpop.eup %730 }
 0x328   : > { %v733_v45 = vpop.eup %732  ;;  %v536_v46 = vmul.f32 %v731_v44, %v533_v42 }
 0x329   : > { %v543_v48 = vmul.f32 %v733_v45, %v534_v43 }
 0x32a   : > { %v538_v49 = vsel %vm537_vm11, %v533_v42, %v536_v46 }
 0x32b   : > { %v541_v51 = vsel %vm539_vm12, %v540_v47, %v538_v49  ;;  %v545_v52 = vsel %vm544_vm13, %v534_v43, %v543_v48 }
 0x32c   : > { %v548_v53 = vsel %vm546_vm14, %v547_v50, %v545_v52  ;;  %v656_v54 = vadd.f32 -0.5, %v541_v51 }
 0x32d   : > { %v657_v55 = vadd.f32 -0.5, %v548_v53 }
 0x32e   : > { %v551_v56 = vmax.f32 %v656_v54, 0.0 }
 0x32f   : > { %v552_v57 = vmax.f32 %v657_v55, 0.0 }
 0x330   : > { %v553_v58 = vmul.f32 %v551_v56, %v551_v56 }
 0x331   : > { %v554_v59 = vmul.f32 %v552_v57, %v552_v57 }
 0x332   : > { %v555_v60 = vmul.f32 %v888_v16, %v553_v58 }
 0x333   : > { %v556_v61 = vmul.f32 %v893_v17, %v554_v59 }
 0x334   : > { %v557_v62 = vsel %vm490_vm10, %v555_v60, 0.0 }
 0x335   : > { %v558_v63 = vsel %vm490_vm10, %v556_v61, 0.0 }
 0x336   : > { %v559_v0 = vadd.f32 %v558_v63, %v557_v62 }
 0x338   : > { %560 = vadd.xlane.f32.xlu0 %v559_v0 }
 0x3c5   : > { %v561_v3 = vpop.xlane.xlu0 %560 }
 0x3c6   : > { %v562_v4 = vadd.f32 %v561_v3, %v401_v2 }
 0x3c8   : > { %564 = vst.msk [vmem:[%s1001_s4] sm:$0xf] %vm563_vm15, %v562_v4 }
 0x3c9 PF: > { %s15_s19 = sadd.s32 1, %s772_s19   ;;  %s1003_s15 = smov %s764_s17 }
 0x3ca   : > { %p12_p13 = scmp.ge.s32.totalorder %s15_s19, 6   ;;  %s1004_s16 = smov %s768_s18 }
 0x3cb   : > { %s1005_s17 = smov %s1008_s20  ;;  %s1006_s18 = smov %s1012_s21 }
 0x3cc   :  { %14 = sbr.rel (!%p12_p13) target bundleno = 3 (0x3), region = 89 }

</bundles_post_ra>
